<compile_context>
chip_gen: v6e
topology: v6e:2x2x1
jax: 0.10.0
libtpu: 0.0.40
codegen_flags: <defaults>
</compile_context>

<pallas_src>
import functools

import jax
import jax.numpy as jnp
from jax.experimental import pallas as pl
from jax.experimental.pallas import tpu as pltpu


def self_output_kernel(h_ref, x_ref, w_ref, b_ref, g_ref, beta_ref, o_ref,
                       *, inv_h, eps):
    # h_ref: (TM, H) hidden_states row tile (native dtype)
    # x_ref: (TM, H) residual row tile (native dtype)
    # w_ref: (H, H)  dense weight, PyTorch layout (y = h @ W^T)
    # b_ref, g_ref, beta_ref: (1, H) f32 (pre-cast in wrapper)
    # dense: contract h's last dim with w's last dim -> h @ W^T, f32 accumulate
    y = jax.lax.dot_general(
        h_ref[...], w_ref[...],
        dimension_numbers=(((1,), (1,)), ((), ())),
        preferred_element_type=jnp.float32,
    )
    y = y + b_ref[...]

    # dropout: identity in eval mode.

    # residual add (f32)
    y = y + x_ref[...].astype(jnp.float32)

    # LayerNorm over last axis (biased variance, eps=1e-12), f32 statistics
    u = jnp.sum(y, axis=-1, keepdims=True) * inv_h
    d = y - u
    s = jnp.sum(d * d, axis=-1, keepdims=True) * inv_h
    yn = d * jax.lax.rsqrt(s + eps)
    out = g_ref[...] * yn + beta_ref[...]
    o_ref[...] = out.astype(o_ref.dtype)


def self_output(hidden_states, input_tensor, dense_w, dense_b, ln_w, ln_b,
                *, tm=512, eps=1e-12):
    """hidden_states, input_tensor: [B, S, H]. dense_w: [H, H] (PyTorch layout,
    i.e. y = x @ dense_w.T + dense_b)."""
    B, S, H = hidden_states.shape
    N = B * S
    h2 = hidden_states.reshape(N, H)
    x2 = input_tensor.reshape(N, H)
    # small 1xH params: cast to f32 once outside the hot per-tile body
    b2 = dense_b.astype(jnp.float32).reshape(1, H)
    g2 = ln_w.astype(jnp.float32).reshape(1, H)
    beta2 = ln_b.astype(jnp.float32).reshape(1, H)

    # Row tile: multiple of 8 sublanes; fall back to the full N if it's small.
    if N <= tm:
        TM = N
    else:
        TM = tm
    grid = (pl.cdiv(N, TM),)

    # VMEM budget: double-buffered activation tiles (h, x, out) + resident
    # weight (double-buffered by the pipeline) + tiny 1xH params.
    act_bytes = jnp.dtype(hidden_states.dtype).itemsize
    w_bytes = jnp.dtype(dense_w.dtype).itemsize
    est = 2 * (3 * TM * H * act_bytes) + 2 * (H * H * w_bytes) + 8 * H * 4
    vmem_limit = int(min(max(2 * est, 16 << 20), 48 << 20))

    kernel = functools.partial(self_output_kernel, inv_h=1.0 / H, eps=eps)

    out = pl.pallas_call(
        kernel,
        out_shape=jax.ShapeDtypeStruct((N, H), hidden_states.dtype),
        grid_spec=pltpu.PrefetchScalarGridSpec(
            num_scalar_prefetch=0,
            grid=grid,
            in_specs=[
                pl.BlockSpec((TM, H), lambda i: (i, 0)),   # hidden_states tile
                pl.BlockSpec((TM, H), lambda i: (i, 0)),   # residual tile
                pl.BlockSpec((H, H), lambda i: (0, 0)),    # weight (resident)
                pl.BlockSpec((1, H), lambda i: (0, 0)),    # bias
                pl.BlockSpec((1, H), lambda i: (0, 0)),    # ln gamma
                pl.BlockSpec((1, H), lambda i: (0, 0)),    # ln beta
            ],
            out_specs=pl.BlockSpec((TM, H), lambda i: (i, 0)),
        ),
        compiler_params=pltpu.CompilerParams(
            dimension_semantics=("parallel",),
            vmem_limit_bytes=vmem_limit,
        ),
    )(h2, x2, dense_w, b2, g2, beta2)
    return out.reshape(B, S, H)


if __name__ == "__main__":
    key = jax.random.PRNGKey(0)
    B, S, H = 2, 8, 32
    k1, k2, k3, k4 = jax.random.split(key, 4)

    hidden_states = jax.random.normal(k1, (B, S, H), dtype=jnp.float32)
    input_tensor = jax.random.normal(k2, (B, S, H), dtype=jnp.float32)

    # deterministic parameter init (synthetic; matches nn.Linear / LayerNorm shapes)
    dense_w = jax.random.normal(k3, (H, H), dtype=jnp.float32) * (1.0 / jnp.sqrt(H))
    dense_b = jax.random.normal(k4, (H,), dtype=jnp.float32) * 0.01
    ln_w = jnp.ones((H,), dtype=jnp.float32)
    ln_b = jnp.zeros((H,), dtype=jnp.float32)

    out = self_output(hidden_states, input_tensor, dense_w, dense_b, ln_w, ln_b)
    jax.block_until_ready(out)

    # pure-JAX reference check
    y_ref = hidden_states @ dense_w.T + dense_b + input_tensor
    u = y_ref.mean(-1, keepdims=True)
    s = ((y_ref - u) ** 2).mean(-1, keepdims=True)
    ref = ln_w * ((y_ref - u) / jnp.sqrt(s + 1e-12)) + ln_b
    assert jnp.allclose(out, ref, atol=1e-4, rtol=1e-4), "mismatch vs reference"

    print("KERNEL_OK")
</pallas_src>

<mosaic_0001>
module attributes {stable_mosaic.version = 11 : i64} {
  func.func @self_output_kernel(%arg0: i32, %arg1: memref<16x32xf32, #tpu.memory_space<vmem>>, %arg2: memref<16x32xf32, #tpu.memory_space<vmem>>, %arg3: memref<32x32xf32, #tpu.memory_space<vmem>>, %arg4: memref<1x32xf32, #tpu.memory_space<vmem>>, %arg5: memref<1x32xf32, #tpu.memory_space<vmem>>, %arg6: memref<1x32xf32, #tpu.memory_space<vmem>>, %arg7: memref<16x32xf32, #tpu.memory_space<vmem>>) attributes {dimension_semantics = [#tpu.dimension_semantics<parallel>], iteration_bounds = array<i64: 1>, scalar_prefetch = 0 : i64, scratch_operands = 0 : i64, tpu.core_type = #tpu.core_type<tc>, window_params = [{transform_indices = @transform_0, window_bounds = array<i64: 16, 32>}, {transform_indices = @transform_1, window_bounds = array<i64: 16, 32>}, {pipeline_mode = #tpu.pipeline_mode<synchronous>, transform_indices = @transform_2, window_bounds = array<i64: 32, 32>}, {pipeline_mode = #tpu.pipeline_mode<synchronous>, transform_indices = @transform_3, window_bounds = array<i64: 1, 32>}, {pipeline_mode = #tpu.pipeline_mode<synchronous>, transform_indices = @transform_4, window_bounds = array<i64: 1, 32>}, {pipeline_mode = #tpu.pipeline_mode<synchronous>, transform_indices = @transform_5, window_bounds = array<i64: 1, 32>}, {transform_indices = @transform_6, window_bounds = array<i64: 16, 32>}]} {
    %c0 = arith.constant 0 : index
    %c0_0 = arith.constant 0 : index
    %0 = vector.load %arg1[%c0, %c0_0] : memref<16x32xf32, #tpu.memory_space<vmem>>, vector<16x32xf32>
    %c0_1 = arith.constant 0 : index
    %c0_2 = arith.constant 0 : index
    %1 = vector.load %arg3[%c0_1, %c0_2] : memref<32x32xf32, #tpu.memory_space<vmem>>, vector<32x32xf32>
    %cst = arith.constant dense<0.000000e+00> : vector<16x32xf32>
    %2 = tpu.matmul %0, %1, %cst {dimension_numbers = #tpu.dot_dimension_numbers<[1], [1], [0], [0], [0, 0, 1, 0], [], []>} : vector<16x32xf32>, vector<32x32xf32>, vector<16x32xf32> -> vector<16x32xf32>
    %c0_3 = arith.constant 0 : index
    %c0_4 = arith.constant 0 : index
    %3 = vector.load %arg4[%c0_3, %c0_4] : memref<1x32xf32, #tpu.memory_space<vmem>>, vector<1x32xf32>
    %4 = vector.broadcast %3 : vector<1x32xf32> to vector<16x32xf32>
    %5 = arith.addf %2, %4 : vector<16x32xf32>
    %c0_5 = arith.constant 0 : index
    %c0_6 = arith.constant 0 : index
    %6 = vector.load %arg2[%c0_5, %c0_6] : memref<16x32xf32, #tpu.memory_space<vmem>>, vector<16x32xf32>
    %7 = arith.addf %5, %6 : vector<16x32xf32>
    %cst_7 = arith.constant dense<0.000000e+00> : vector<16xf32>
    %8 = vector.multi_reduction <add>, %7, %cst_7 [1] : vector<16x32xf32> to vector<16xf32>
    %9 = vector.shape_cast %8 : vector<16xf32> to vector<16x1xf32>
    %cst_8 = arith.constant 3.125000e-02 : f32
    %10 = vector.broadcast %cst_8 : f32 to vector<16x1xf32>
    %11 = arith.mulf %9, %10 : vector<16x1xf32>
    %12 = vector.broadcast %11 : vector<16x1xf32> to vector<16x32xf32>
    %13 = arith.subf %7, %12 : vector<16x32xf32>
    %14 = arith.mulf %13, %13 : vector<16x32xf32>
    %cst_9 = arith.constant dense<0.000000e+00> : vector<16xf32>
    %15 = vector.multi_reduction <add>, %14, %cst_9 [1] : vector<16x32xf32> to vector<16xf32>
    %16 = vector.shape_cast %15 : vector<16xf32> to vector<16x1xf32>
    %cst_10 = arith.constant 3.125000e-02 : f32
    %17 = vector.broadcast %cst_10 : f32 to vector<16x1xf32>
    %18 = arith.mulf %16, %17 : vector<16x1xf32>
    %cst_11 = arith.constant 9.99999996E-13 : f32
    %19 = vector.broadcast %cst_11 : f32 to vector<16x1xf32>
    %20 = arith.addf %18, %19 : vector<16x1xf32>
    %21 = math.rsqrt %20 : vector<16x1xf32>
    %22 = vector.broadcast %21 : vector<16x1xf32> to vector<16x32xf32>
    %23 = arith.mulf %13, %22 : vector<16x32xf32>
    %c0_12 = arith.constant 0 : index
    %c0_13 = arith.constant 0 : index
    %24 = vector.load %arg5[%c0_12, %c0_13] : memref<1x32xf32, #tpu.memory_space<vmem>>, vector<1x32xf32>
    %25 = vector.broadcast %24 : vector<1x32xf32> to vector<16x32xf32>
    %26 = arith.mulf %25, %23 : vector<16x32xf32>
    %c0_14 = arith.constant 0 : index
    %c0_15 = arith.constant 0 : index
    %27 = vector.load %arg6[%c0_14, %c0_15] : memref<1x32xf32, #tpu.memory_space<vmem>>, vector<1x32xf32>
    %28 = vector.broadcast %27 : vector<1x32xf32> to vector<16x32xf32>
    %29 = arith.addf %26, %28 : vector<16x32xf32>
    %c0_16 = arith.constant 0 : index
    %c0_17 = arith.constant 0 : index
    %30 = vector.load %arg7[%c0_16, %c0_17] : memref<16x32xf32, #tpu.memory_space<vmem>>, vector<16x32xf32>
    tpu.vector_store %arg7[%c0_16, %c0_17], %29 {strides = array<i32>} : memref<16x32xf32, #tpu.memory_space<vmem>>, vector<16x32xf32>,
    return
  }
  func.func @transform_0(%arg0: i32) -> (i32, i32) {
    %c0_i32 = arith.constant 0 : i32
    %c0_i32_0 = arith.constant 0 : i32
    return %arg0, %c0_i32 : i32, i32
  }
  func.func @transform_1(%arg0: i32) -> (i32, i32) {
    %c0_i32 = arith.constant 0 : i32
    %c0_i32_0 = arith.constant 0 : i32
    return %arg0, %c0_i32 : i32, i32
  }
  func.func @transform_2(%arg0: i32) -> (i32, i32) {
    %c0_i32 = arith.constant 0 : i32
    %c0_i32_0 = arith.constant 0 : i32
    %c0_i32_1 = arith.constant 0 : i32
    return %c0_i32, %c0_i32_0 : i32, i32
  }
  func.func @transform_3(%arg0: i32) -> (i32, i32) {
    %c0_i32 = arith.constant 0 : i32
    %c0_i32_0 = arith.constant 0 : i32
    %c0_i32_1 = arith.constant 0 : i32
    return %c0_i32, %c0_i32_0 : i32, i32
  }
  func.func @transform_4(%arg0: i32) -> (i32, i32) {
    %c0_i32 = arith.constant 0 : i32
    %c0_i32_0 = arith.constant 0 : i32
    %c0_i32_1 = arith.constant 0 : i32
    return %c0_i32, %c0_i32_0 : i32, i32
  }
  func.func @transform_5(%arg0: i32) -> (i32, i32) {
    %c0_i32 = arith.constant 0 : i32
    %c0_i32_0 = arith.constant 0 : i32
    %c0_i32_1 = arith.constant 0 : i32
    return %c0_i32, %c0_i32_0 : i32, i32
  }
  func.func @transform_6(%arg0: i32) -> (i32, i32) {
    %c0_i32 = arith.constant 0 : i32
    %c0_i32_0 = arith.constant 0 : i32
    return %arg0, %c0_i32 : i32, i32
  }
}

</mosaic_0001>

<bundles_post_ra>
// kernel: tpu_custom_call.1
= control target key start
LH: loop header
LB: loop body
LE: loop exit
PB: predicated region body
PF: predicated region fallthrough
CT: control target
= control target key end

     0   :  { %11 = vsyncpa [#allocation3], 0  ;;  %s452_s0 = inlined_call_operand.hbm [shape: f32[16,32], index: 0, kind: input, shape index: {}]   ;;  %s453_s1 = inlined_call_operand.hbm [shape: f32[16,32], index: 1, kind: input, shape index: {}]   ;;  %s454_s2 = inlined_call_operand.hbm [shape: f32[32,32], index: 2, kind: input, shape index: {}]   ;;  %s455_s3 = inlined_call_operand.vmem [shape: f32[1,32], index: 3, kind: input, shape index: {}]   ;;  %s456_s4 = inlined_call_operand.vmem [shape: f32[1,32], index: 4, kind: input, shape index: {}]   ;;  %s457_s5 = inlined_call_operand.vmem [shape: f32[1,32], index: 5, kind: input, shape index: {}]   ;;  %s458_s6 = inlined_call_operand.hbm [shape: f32[16,32], index: 6, kind: output, shape index: {}]  }
   0x1   :  { %12 = vsyncpa [#allocation6], 0 }
   0x2   :  { %13 = vsyncpa [#allocation4], 0  ;;  %s362_s21 = smov [#allocation5]   ;;  %s363_s23 = smov [#allocation2]  }
   0x3   :  { %s31_s22 = sshll.u32 %s362_s21, 4  ;;  %s19_s24 = sshll.u32 %s363_s23, 4  ;;  %s32_s22 = int_to_ptr.vmem [resolvable:$true] %s31_s22  ;;  %s20_s24 = int_to_ptr.vmem [resolvable:$true] %s19_s24 }
   0x4   :  { %s284_s25 = scalar_lea.vmem %s32_s22, 256  ;;  %p289_p1 = scmp.lt.s32.totalorder %s32_s22, %s32_s22 }
   0x5   :  { %p285_p0 = scmp.ne.s32.totalorder %s32_s22, %s284_s25  ;;  %p290_p2 = scmp.lt.s32.totalorder %s284_s25, %s284_s25 }
   0x7   :  { %p291_p3 = por %p290_p2, %p289_p1 }
   0x9   :  { %p292_p4 = pnand %p291_p3, %p285_p0 }
   0xb   :  { %295 = shalt.err (!%p292_p4)
}
   0xc   :  { %s364_s26 = smov 128   ;;  %s365_s27 = smov 8  }
   0xd   :  { %37 = dma.hbm_to_vmem [thread:$0]  %s453_s1, 256, %s32_s22, [#allocation6], %s364_s26, %s364_s26, %s365_s27  }
   0xe   :  { %s304_s30 = scalar_lea.vmem %s20_s24, 256  ;;  %p309_p6 = scmp.lt.s32.totalorder %s20_s24, %s20_s24 }
   0xf   :  { %p305_p5 = scmp.ne.s32.totalorder %s20_s24, %s304_s30  ;;  %p310_p7 = scmp.lt.s32.totalorder %s304_s30, %s304_s30 }
  0x11   :  { %p311_p8 = por %p310_p7, %p309_p6 }
  0x13   :  { %p312_p9 = pnand %p311_p8, %p305_p5 }
  0x15   :  { %315 = shalt.err (!%p312_p9)
}
  0x16   :  { %25 = dma.hbm_to_vmem [thread:$0]  %s452_s0, 256, %s20_s24, [#allocation3], %s364_s26, %s364_s26, %s365_s27  }
  0x17   :  { %s366_s9 = smov [#allocation7]  }
  0x18   :  { %s43_s10 = sshll.u32 %s366_s9, 4  ;;  %s44_s10 = int_to_ptr.vmem [resolvable:$true] %s43_s10 }
  0x19   :  { %s324_s11 = scalar_lea.vmem %s44_s10, 512  ;;  %p329_p11 = scmp.lt.s32.totalorder %s44_s10, %s44_s10 }
  0x1a   :  { %p325_p10 = scmp.ne.s32.totalorder %s44_s10, %s324_s11  ;;  %p330_p12 = scmp.lt.s32.totalorder %s324_s11, %s324_s11 }
  0x1c   :  { %p331_p13 = por %p330_p12, %p329_p11 }
  0x1e   :  { %p332_p0 = pnand %p331_p13, %p325_p10 }
  0x20   :  { %335 = shalt.err (!%p332_p0)
}
  0x21   :  { %49 = dma.hbm_to_vmem [thread:$0]  %s454_s2, 512, %s44_s10, [#allocation6], %s364_s26, %s364_s26, %s365_s27  }
  0x22   :  { %356 = dma.done.wait [#allocation3], 256  }
  0x23   :  { %357 = vsyncadd [#allocation3], 4294967040 }
  0x24   :  { %358 = dma.done.wait [#allocation6], 768  }
  0x25   :  { %359 = vsyncadd [#allocation6], 4294966528  ;;  %vm78_vm0 = vcmask 261120   ;;  %v70_v0 = vld [vmem:[#allocation7 + $0x18] sm:$0xff]  ;;  %v69_v1 = vld [vmem:[#allocation7 + $0x10] sm:$0xff]  ;;  %s367_s16 = smov [#allocation8]  }
  0x26   :  { %255 = vmatprep.subr.msk.mxu0 %vm78_vm0, %v70_v0  ;;  %v65_v2 = vld [vmem:[#allocation2] sm:$0xff]  ;;  %v68_v3 = vld [vmem:[#allocation7 + $0x8] sm:$0xff]  ;;  %v172_v9 = vld [vmem:[#allocation5] sm:$0xff]  ;;  %s227_s17 = sshll.u32 %s367_s16, 4  ;;  %s228_s17 = int_to_ptr.vmem [resolvable:$true] %s227_s17 }
  0x27   :  { %256 = vmatpush3.xpose.msk.msra.mxu0 %vm78_vm0, %v70_v0  ;;  %263 = vmatprep.mubr.msk.f32.mxu0 %vm78_vm0, %v65_v2  ;;  %v67_v4 = vld [vmem:[#allocation7] sm:$0xff]  ;;  %v66_v5 = vld [vmem:[#allocation2 + $0x8] sm:$0xff]  ;;  %v173_v12 = vld [vmem:[#allocation5 + $0x8] sm:$0xff]  ;;  %s336_s18 = scalar_lea.vmem %s228_s17, 256  ;;  %p341_p2 = scmp.lt.s32.totalorder %s228_s17, %s228_s17 }
  0x28   :  { %257 = vmatprep.subr.msk.mxu0 %vm78_vm0, %v69_v1  ;;  %v240_v7 = vld [vmem:[%s455_s3] ss:$0 sm:$0xff]  ;;  %p337_p1 = scmp.ne.s32.totalorder %s228_s17, %s336_s18  ;;  %p342_p3 = scmp.lt.s32.totalorder %s336_s18, %s336_s18 }
  0x29   :  { %v247_v34 = vld [vmem:[%s456_s4] ss:$0 sm:$0xff] }
  0x2a   :  { %v248_v36 = vld [vmem:[%s457_s5] ss:$0 sm:$0xff]  ;;  %p343_p4 = por %p342_p3, %p341_p2 }
  0x2b   :  { %258 = vmatpush3.xpose.msk.msra.mxu0 %vm78_vm0, %v69_v1 }
  0x2c   :  { %259 = vmatprep.subr.msk.mxu0 %vm78_vm0, %v68_v3  ;;  %p344_p5 = pnand %p343_p4, %p337_p1 }
  0x2f   :  { %260 = vmatpush3.xpose.msk.msra.mxu0 %vm78_vm0, %v68_v3 }
  0x30   :  { %261 = vmatprep.subr.msk.mxu0 %vm78_vm0, %v67_v4 }
  0x33   :  { %262 = vmatpush3.xpose.msk.msra.mxu0 %vm78_vm0, %v67_v4 }
  0x36   :  { %264 = vmatmul.mubr.msk.f32.vlgmr.msra.gmra.mxu0 %vm78_vm0, %v66_v5 }
  0xf6   :  { %v265_v6 = vpop.f32.mrf.mxu0 }
  0xf7   :  { %v169_v10 = vadd.f32 %v265_v6, %v240_v7 }
  0xf8   :  { %v163_v8 = vpop.f32.mrf.mxu0 }
  0xf9   :  { %v164_v11 = vadd.f32 %v240_v7, %v163_v8  ;;  %v175_v15 = vadd.f32 %v173_v12, %v169_v10 }
  0xfb   :  { %v174_v13 = vadd.f32 %v172_v9, %v164_v11  ;;  %v179_v16 = vsel %vm78_vm0, %v175_v15, 0.0 }
  0xfd   :  { %v176_v14 = vsel %vm78_vm0, %v174_v13, 0.0 }
  0xfe   :  { %177 = vadd.xlane.f32.xlu0 %v176_v14 }
 0x102   :  { %180 = vadd.xlane.f32.xlu0 %v179_v16 }
 0x187   :  { %v178_v17 = vpop.xlane.xlu0 %177 }
 0x188   :  { %v182_v18 = vmul.f32 0.03125, %v178_v17 }
 0x18a   :  { %v184_v19 = vsub.f32 %v174_v13, %v182_v18 }
 0x18b   :  { %v181_v20 = vpop.xlane.xlu0 %180 }
 0x18c   :  { %v183_v21 = vmul.f32 0.03125, %v181_v20  ;;  %v186_v22 = vmul.f32 %v184_v19, %v184_v19 }
 0x18e   :  { %v185_v23 = vsub.f32 %v175_v15, %v183_v21  ;;  %v188_v24 = vsel %vm78_vm0, %v186_v22, 0.0 }
 0x18f   :  { %189 = vadd.xlane.f32.xlu1 %v188_v24 }
 0x190   :  { %v187_v25 = vmul.f32 %v185_v23, %v185_v23 }
 0x192   :  { %v191_v26 = vsel %vm78_vm0, %v187_v25, 0.0 }
 0x193   :  { %192 = vadd.xlane.f32.xlu1 %v191_v26 }
 0x218   :  { %v190_v27 = vpop.xlane.xlu1 %189 }
 0x219   :  { %v194_v28 = vmul.f32 0.03125, %v190_v27 }
 0x21b   :  { %v196_v29 = vadd.f32 1e-12, %v194_v28 }
 0x21c   :  { %v193_v30 = vpop.xlane.xlu1 %192 }
 0x21d   :  { %272 = vrsqrt.f32 %v196_v29  ;;  %v195_v31 = vmul.f32 0.03125, %v193_v30 }
 0x21f   :  { %v197_v32 = vadd.f32 1e-12, %v195_v31 }
 0x221   :  { %274 = vrsqrt.f32 %v197_v32 }
 0x22a   :  { %v273_v33 = vpop.eup %272 }
 0x22b   :  { %v200_v35 = vmul.f32 %v273_v33, %v184_v19 }
 0x22d   :  { %v209_v37 = vmul.f32 %v247_v34, %v200_v35 }
 0x22e   :  { %v275_v38 = vpop.eup %274 }
 0x22f   :  { %v201_v39 = vmul.f32 %v275_v38, %v185_v23  ;;  %v218_v40 = vadd.f32 %v248_v36, %v209_v37 }
 0x231   :  { %v210_v41 = vmul.f32 %v247_v34, %v201_v39  ;;  %220 = vst.msk [vmem:[#allocation8] sm:$0xff] %vm78_vm0, %v218_v40 }
 0x233   :  { %v219_v42 = vadd.f32 %v248_v36, %v210_v41 }
 0x235   :  { %221 = vst.msk [vmem:[#allocation8 + $0x8] sm:$0xff] %vm78_vm0, %v219_v42 }
 0x236   :  { %347 = shalt.err (!%p344_p5)
}
 0x237   :  { %233 = dma.vmem_to_hbm [thread:$0]  %s228_s17, 256, %s458_s6, [#allocation4], %s364_s26, %s364_s26, %s365_s27  }
 0x238   :  { %360 = dma.done.wait [#allocation4], 256  }
 0x239   :  { %361 = vsyncadd [#allocation4], 4294967040 }
 0x23a   :  { %237 = vsyncpa [#allocation3], 1 }
 0x23b   :  { %238 = vsyncpa [#allocation6], 1 }
 0x23c   :  { %239 = vsyncpa [#allocation4], 1 }

</bundles_post_ra>
